<compile_context>
chip_gen: v7x
topology: tpu7x:2x2x1
jax: 0.10.0
libtpu: 0.0.40
codegen_flags: <defaults>
</compile_context>

<pallas_src>
import math
import jax
import jax.numpy as jnp
from jax.experimental import pallas as pl
from jax.experimental.pallas import tpu as pltpu  # noqa: F401  (kept for TPU-specific knobs)

_DOT_PRECISION = jax.lax.Precision.HIGHEST


def _rnn_decoder_kernel(enc_ref, x_ref, u_ref, v_ref, b_ref, out_ref):
    # enc_ref : [bz, hidden]        initial hidden state h_0
    # x_ref   : [bz, seq, input]    decoder inputs (module-native layout)
    # u_ref   : [input, hidden]
    # v_ref   : [hidden, hidden]
    # b_ref   : [1, hidden]
    # out_ref : [bz, seq, hidden]   outputs (module-native layout)
    bz, seq, hidden = out_ref.shape
    input_sz = x_ref.shape[-1]

    # Hoisted input projection: one MXU GEMM for ALL timesteps + bias.
    # The reshapes only merge/split leading dims on 8-sublane boundaries, so
    # they are layout-trivial retiles in VMEM (no data movement across lanes).
    x2 = x_ref[...].reshape(bz * seq, input_sz)
    p = (jnp.dot(x2, u_ref[...],
                 preferred_element_type=jnp.float32,
                 precision=_DOT_PRECISION)
         + b_ref[...]).reshape(bz, seq, hidden)

    v = v_ref[...]
    h = enc_ref[...].astype(jnp.float32)

    # Fully-unrolled serial recurrence.  Per-step critical path: one
    # [bz,hidden] x [hidden,hidden] dot + add + tanh.
    for t in range(seq):
        h = jnp.tanh(p[:, t, :] + jnp.dot(h, v,
                                          preferred_element_type=jnp.float32,
                                          precision=_DOT_PRECISION))
        out_ref[:, t, :] = h.astype(out_ref.dtype)


def decoder_block_forward(encoder_inputs, decoder_inputs, U_i, V_i, b_i):
    """encoder_inputs: [bz, hidden]; decoder_inputs: [bz, seq, input].
    Returns (encoder_inputs, decoder_outputs[bz, seq, hidden]) like the module."""
    bz, seq, input_sz = decoder_inputs.shape
    hidden_sz = encoder_inputs.shape[1]
    b2d = b_i.reshape(1, hidden_sz)  # contiguous reshape: free, no transpose

    flops = (2 * bz * seq * input_sz * hidden_sz          # hoisted X @ U
             + 2 * seq * bz * hidden_sz * hidden_sz       # recurrence h @ V
             + 3 * seq * bz * hidden_sz)                  # bias adds / sums
    bytes_accessed = 4 * (bz * hidden_sz + bz * seq * input_sz
                          + input_sz * hidden_sz + hidden_sz * hidden_sz
                          + hidden_sz + bz * seq * hidden_sz)

    decoder_outputs = pl.pallas_call(
        _rnn_decoder_kernel,
        out_shape=jax.ShapeDtypeStruct((bz, seq, hidden_sz), jnp.float32),
        grid=(1,),  # single invocation; everything (<10 KiB) lives in VMEM
        in_specs=[
            pl.BlockSpec((bz, hidden_sz), lambda i: (0, 0)),          # encoder_inputs
            pl.BlockSpec((bz, seq, input_sz), lambda i: (0, 0, 0)),   # decoder_inputs
            pl.BlockSpec((input_sz, hidden_sz), lambda i: (0, 0)),    # U_i
            pl.BlockSpec((hidden_sz, hidden_sz), lambda i: (0, 0)),   # V_i
            pl.BlockSpec((1, hidden_sz), lambda i: (0, 0)),           # b_i
        ],
        out_specs=pl.BlockSpec((bz, seq, hidden_sz), lambda i: (0, 0, 0)),
        cost_estimate=pl.CostEstimate(
            flops=flops,
            transcendentals=seq * bz * hidden_sz,   # tanh
            bytes_accessed=bytes_accessed),
    )(encoder_inputs, decoder_inputs, U_i, V_i, b2d)

    return encoder_inputs, decoder_outputs


def _reference_forward(encoder_inputs, decoder_inputs, U_i, V_i, b_i):
    """Pure-JAX reference matching the PyTorch loop."""
    seq = decoder_inputs.shape[1]
    h_t = encoder_inputs
    outs = []
    for t in range(seq):
        x_t = decoder_inputs[:, t, :]
        h_t = jnp.tanh(jnp.dot(x_t, U_i, precision=_DOT_PRECISION)
                       + jnp.dot(h_t, V_i, precision=_DOT_PRECISION) + b_i)
        outs.append(h_t)
    return encoder_inputs, jnp.stack(outs, axis=1)


if __name__ == "__main__":
    # Small shapes consistent with the module's forward signature.
    bz, seq, input_sz, hidden_sz = 2, 8, 16, 32

    key = jax.random.PRNGKey(0)
    k_enc, k_dec, k_u, k_v, k_b = jax.random.split(key, 5)

    # Deterministic parameter init mirroring init_weights(): U(-stdv, stdv).
    stdv = 1.0 / math.sqrt(hidden_sz)
    U_i = jax.random.uniform(k_u, (input_sz, hidden_sz), jnp.float32, -stdv, stdv)
    V_i = jax.random.uniform(k_v, (hidden_sz, hidden_sz), jnp.float32, -stdv, stdv)
    b_i = jax.random.uniform(k_b, (hidden_sz,), jnp.float32, -stdv, stdv)

    encoder_inputs = jax.random.normal(k_enc, (bz, hidden_sz), jnp.float32)
    decoder_inputs = jax.random.normal(k_dec, (bz, seq, input_sz), jnp.float32)

    enc_out, dec_out = jax.jit(decoder_block_forward)(
        encoder_inputs, decoder_inputs, U_i, V_i, b_i)
    jax.block_until_ready((enc_out, dec_out))

    # Correctness check vs pure-JAX reference of the PyTorch loop.
    ref_enc, ref_dec = _reference_forward(encoder_inputs, decoder_inputs, U_i, V_i, b_i)
    assert enc_out.shape == (bz, hidden_sz)
    assert dec_out.shape == (bz, seq, hidden_sz)
    assert jnp.allclose(enc_out, ref_enc)
    assert jnp.allclose(dec_out, ref_dec, atol=1e-5, rtol=1e-5)

    print("KERNEL_OK")
</pallas_src>

<mosaic_0001>
module attributes {stable_mosaic.version = 11 : i64} {
  func.func @_rnn_decoder_kernel(%arg0: i32, %arg1: memref<2x32xf32, #tpu.memory_space<vmem>>, %arg2: memref<2x8x16xf32, #tpu.memory_space<vmem>>, %arg3: memref<16x32xf32, #tpu.memory_space<vmem>>, %arg4: memref<32x32xf32, #tpu.memory_space<vmem>>, %arg5: memref<1x32xf32, #tpu.memory_space<vmem>>, %arg6: memref<2x8x32xf32, #tpu.memory_space<vmem>>) attributes {dimension_semantics = [#tpu.dimension_semantics<arbitrary>], iteration_bounds = array<i64: 1>, scalar_prefetch = 0 : i64, scratch_operands = 0 : i64, tpu.core_type = #tpu.core_type<tc>, window_params = [{pipeline_mode = #tpu.pipeline_mode<synchronous>, transform_indices = @transform_0, window_bounds = array<i64: 2, 32>}, {pipeline_mode = #tpu.pipeline_mode<synchronous>, transform_indices = @transform_1, window_bounds = array<i64: 2, 8, 16>}, {pipeline_mode = #tpu.pipeline_mode<synchronous>, transform_indices = @transform_2, window_bounds = array<i64: 16, 32>}, {pipeline_mode = #tpu.pipeline_mode<synchronous>, transform_indices = @transform_3, window_bounds = array<i64: 32, 32>}, {pipeline_mode = #tpu.pipeline_mode<synchronous>, transform_indices = @transform_4, window_bounds = array<i64: 1, 32>}, {pipeline_mode = #tpu.pipeline_mode<synchronous>, transform_indices = @transform_5, window_bounds = array<i64: 2, 8, 32>}]} {
    %c0 = arith.constant 0 : index
    %c0_0 = arith.constant 0 : index
    %c0_1 = arith.constant 0 : index
    %0 = vector.load %arg2[%c0, %c0_0, %c0_1] : memref<2x8x16xf32, #tpu.memory_space<vmem>>, vector<2x8x16xf32>
    %1 = vector.shape_cast %0 : vector<2x8x16xf32> to vector<16x16xf32>
    %c0_2 = arith.constant 0 : index
    %c0_3 = arith.constant 0 : index
    %2 = vector.load %arg3[%c0_2, %c0_3] : memref<16x32xf32, #tpu.memory_space<vmem>>, vector<16x32xf32>
    %cst = arith.constant dense<0.000000e+00> : vector<16x32xf32>
    %3 = tpu.matmul %1, %2, %cst {dimension_numbers = #tpu.dot_dimension_numbers<[1], [0], [0], [1], [0, 0, 1, 1], [], []>, precision = #tpu.contract_precision<fp32>} : vector<16x16xf32>, vector<16x32xf32>, vector<16x32xf32> -> vector<16x32xf32>
    %c0_4 = arith.constant 0 : index
    %c0_5 = arith.constant 0 : index
    %4 = vector.load %arg5[%c0_4, %c0_5] : memref<1x32xf32, #tpu.memory_space<vmem>>, vector<1x32xf32>
    %5 = vector.broadcast %4 : vector<1x32xf32> to vector<16x32xf32>
    %6 = arith.addf %3, %5 : vector<16x32xf32>
    %7 = vector.shape_cast %6 : vector<16x32xf32> to vector<2x8x32xf32>
    %c0_6 = arith.constant 0 : index
    %c0_7 = arith.constant 0 : index
    %8 = vector.load %arg4[%c0_6, %c0_7] : memref<32x32xf32, #tpu.memory_space<vmem>>, vector<32x32xf32>
    %c0_8 = arith.constant 0 : index
    %c0_9 = arith.constant 0 : index
    %9 = vector.load %arg1[%c0_8, %c0_9] : memref<2x32xf32, #tpu.memory_space<vmem>>, vector<2x32xf32>
    %10 = vector.extract_strided_slice %7 {offsets = [0, 0, 0], sizes = [2, 1, 32], strides = [1, 1, 1]} : vector<2x8x32xf32> to vector<2x1x32xf32>
    %11 = vector.shape_cast %10 : vector<2x1x32xf32> to vector<2x32xf32>
    %cst_10 = arith.constant dense<0.000000e+00> : vector<2x32xf32>
    %12 = tpu.matmul %9, %8, %cst_10 {dimension_numbers = #tpu.dot_dimension_numbers<[1], [0], [0], [1], [0, 0, 1, 1], [], []>, precision = #tpu.contract_precision<fp32>} : vector<2x32xf32>, vector<32x32xf32>, vector<2x32xf32> -> vector<2x32xf32>
    %13 = arith.addf %11, %12 : vector<2x32xf32>
    %14 = math.tanh %13 : vector<2x32xf32>
    %c0_11 = arith.constant 0 : index
    %c0_12 = arith.constant 0 : index
    %c0_13 = arith.constant 0 : index
    %15 = vector.load %arg6[%c0_11, %c0_12, %c0_13] : memref<2x8x32xf32, #tpu.memory_space<vmem>>, vector<2x1x32xf32>
    %16 = vector.shape_cast %15 : vector<2x1x32xf32> to vector<2x32xf32>
    %17 = vector.shape_cast %14 : vector<2x32xf32> to vector<2x1x32xf32>
    tpu.vector_store %arg6[%c0_11, %c0_12, %c0_13], %17 {strides = array<i32>} : memref<2x8x32xf32, #tpu.memory_space<vmem>>, vector<2x1x32xf32>,
    %18 = vector.extract_strided_slice %7 {offsets = [0, 1, 0], sizes = [2, 1, 32], strides = [1, 1, 1]} : vector<2x8x32xf32> to vector<2x1x32xf32>
    %19 = vector.shape_cast %18 : vector<2x1x32xf32> to vector<2x32xf32>
    %cst_14 = arith.constant dense<0.000000e+00> : vector<2x32xf32>
    %20 = tpu.matmul %14, %8, %cst_14 {dimension_numbers = #tpu.dot_dimension_numbers<[1], [0], [0], [1], [0, 0, 1, 1], [], []>, precision = #tpu.contract_precision<fp32>} : vector<2x32xf32>, vector<32x32xf32>, vector<2x32xf32> -> vector<2x32xf32>
    %21 = arith.addf %19, %20 : vector<2x32xf32>
    %22 = math.tanh %21 : vector<2x32xf32>
    %c0_15 = arith.constant 0 : index
    %c1 = arith.constant 1 : index
    %c0_16 = arith.constant 0 : index
    %23 = vector.load %arg6[%c0_15, %c1, %c0_16] : memref<2x8x32xf32, #tpu.memory_space<vmem>>, vector<2x1x32xf32>
    %24 = vector.shape_cast %23 : vector<2x1x32xf32> to vector<2x32xf32>
    %25 = vector.shape_cast %22 : vector<2x32xf32> to vector<2x1x32xf32>
    tpu.vector_store %arg6[%c0_15, %c1, %c0_16], %25 {strides = array<i32>} : memref<2x8x32xf32, #tpu.memory_space<vmem>>, vector<2x1x32xf32>,
    %26 = vector.extract_strided_slice %7 {offsets = [0, 2, 0], sizes = [2, 1, 32], strides = [1, 1, 1]} : vector<2x8x32xf32> to vector<2x1x32xf32>
    %27 = vector.shape_cast %26 : vector<2x1x32xf32> to vector<2x32xf32>
    %cst_17 = arith.constant dense<0.000000e+00> : vector<2x32xf32>
    %28 = tpu.matmul %22, %8, %cst_17 {dimension_numbers = #tpu.dot_dimension_numbers<[1], [0], [0], [1], [0, 0, 1, 1], [], []>, precision = #tpu.contract_precision<fp32>} : vector<2x32xf32>, vector<32x32xf32>, vector<2x32xf32> -> vector<2x32xf32>
    %29 = arith.addf %27, %28 : vector<2x32xf32>
    %30 = math.tanh %29 : vector<2x32xf32>
    %c0_18 = arith.constant 0 : index
    %c2 = arith.constant 2 : index
    %c0_19 = arith.constant 0 : index
    %31 = vector.load %arg6[%c0_18, %c2, %c0_19] : memref<2x8x32xf32, #tpu.memory_space<vmem>>, vector<2x1x32xf32>
    %32 = vector.shape_cast %31 : vector<2x1x32xf32> to vector<2x32xf32>
    %33 = vector.shape_cast %30 : vector<2x32xf32> to vector<2x1x32xf32>
    tpu.vector_store %arg6[%c0_18, %c2, %c0_19], %33 {strides = array<i32>} : memref<2x8x32xf32, #tpu.memory_space<vmem>>, vector<2x1x32xf32>,
    %34 = vector.extract_strided_slice %7 {offsets = [0, 3, 0], sizes = [2, 1, 32], strides = [1, 1, 1]} : vector<2x8x32xf32> to vector<2x1x32xf32>
    %35 = vector.shape_cast %34 : vector<2x1x32xf32> to vector<2x32xf32>
    %cst_20 = arith.constant dense<0.000000e+00> : vector<2x32xf32>
    %36 = tpu.matmul %30, %8, %cst_20 {dimension_numbers = #tpu.dot_dimension_numbers<[1], [0], [0], [1], [0, 0, 1, 1], [], []>, precision = #tpu.contract_precision<fp32>} : vector<2x32xf32>, vector<32x32xf32>, vector<2x32xf32> -> vector<2x32xf32>
    %37 = arith.addf %35, %36 : vector<2x32xf32>
    %38 = math.tanh %37 : vector<2x32xf32>
    %c0_21 = arith.constant 0 : index
    %c3 = arith.constant 3 : index
    %c0_22 = arith.constant 0 : index
    %39 = vector.load %arg6[%c0_21, %c3, %c0_22] : memref<2x8x32xf32, #tpu.memory_space<vmem>>, vector<2x1x32xf32>
    %40 = vector.shape_cast %39 : vector<2x1x32xf32> to vector<2x32xf32>
    %41 = vector.shape_cast %38 : vector<2x32xf32> to vector<2x1x32xf32>
    tpu.vector_store %arg6[%c0_21, %c3, %c0_22], %41 {strides = array<i32>} : memref<2x8x32xf32, #tpu.memory_space<vmem>>, vector<2x1x32xf32>,
    %42 = vector.extract_strided_slice %7 {offsets = [0, 4, 0], sizes = [2, 1, 32], strides = [1, 1, 1]} : vector<2x8x32xf32> to vector<2x1x32xf32>
    %43 = vector.shape_cast %42 : vector<2x1x32xf32> to vector<2x32xf32>
    %cst_23 = arith.constant dense<0.000000e+00> : vector<2x32xf32>
    %44 = tpu.matmul %38, %8, %cst_23 {dimension_numbers = #tpu.dot_dimension_numbers<[1], [0], [0], [1], [0, 0, 1, 1], [], []>, precision = #tpu.contract_precision<fp32>} : vector<2x32xf32>, vector<32x32xf32>, vector<2x32xf32> -> vector<2x32xf32>
    %45 = arith.addf %43, %44 : vector<2x32xf32>
    %46 = math.tanh %45 : vector<2x32xf32>
    %c0_24 = arith.constant 0 : index
    %c4 = arith.constant 4 : index
    %c0_25 = arith.constant 0 : index
    %47 = vector.load %arg6[%c0_24, %c4, %c0_25] : memref<2x8x32xf32, #tpu.memory_space<vmem>>, vector<2x1x32xf32>
    %48 = vector.shape_cast %47 : vector<2x1x32xf32> to vector<2x32xf32>
    %49 = vector.shape_cast %46 : vector<2x32xf32> to vector<2x1x32xf32>
    tpu.vector_store %arg6[%c0_24, %c4, %c0_25], %49 {strides = array<i32>} : memref<2x8x32xf32, #tpu.memory_space<vmem>>, vector<2x1x32xf32>,
    %50 = vector.extract_strided_slice %7 {offsets = [0, 5, 0], sizes = [2, 1, 32], strides = [1, 1, 1]} : vector<2x8x32xf32> to vector<2x1x32xf32>
    %51 = vector.shape_cast %50 : vector<2x1x32xf32> to vector<2x32xf32>
    %cst_26 = arith.constant dense<0.000000e+00> : vector<2x32xf32>
    %52 = tpu.matmul %46, %8, %cst_26 {dimension_numbers = #tpu.dot_dimension_numbers<[1], [0], [0], [1], [0, 0, 1, 1], [], []>, precision = #tpu.contract_precision<fp32>} : vector<2x32xf32>, vector<32x32xf32>, vector<2x32xf32> -> vector<2x32xf32>
    %53 = arith.addf %51, %52 : vector<2x32xf32>
    %54 = math.tanh %53 : vector<2x32xf32>
    %c0_27 = arith.constant 0 : index
    %c5 = arith.constant 5 : index
    %c0_28 = arith.constant 0 : index
    %55 = vector.load %arg6[%c0_27, %c5, %c0_28] : memref<2x8x32xf32, #tpu.memory_space<vmem>>, vector<2x1x32xf32>
    %56 = vector.shape_cast %55 : vector<2x1x32xf32> to vector<2x32xf32>
    %57 = vector.shape_cast %54 : vector<2x32xf32> to vector<2x1x32xf32>
    tpu.vector_store %arg6[%c0_27, %c5, %c0_28], %57 {strides = array<i32>} : memref<2x8x32xf32, #tpu.memory_space<vmem>>, vector<2x1x32xf32>,
    %58 = vector.extract_strided_slice %7 {offsets = [0, 6, 0], sizes = [2, 1, 32], strides = [1, 1, 1]} : vector<2x8x32xf32> to vector<2x1x32xf32>
    %59 = vector.shape_cast %58 : vector<2x1x32xf32> to vector<2x32xf32>
    %cst_29 = arith.constant dense<0.000000e+00> : vector<2x32xf32>
    %60 = tpu.matmul %54, %8, %cst_29 {dimension_numbers = #tpu.dot_dimension_numbers<[1], [0], [0], [1], [0, 0, 1, 1], [], []>, precision = #tpu.contract_precision<fp32>} : vector<2x32xf32>, vector<32x32xf32>, vector<2x32xf32> -> vector<2x32xf32>
    %61 = arith.addf %59, %60 : vector<2x32xf32>
    %62 = math.tanh %61 : vector<2x32xf32>
    %c0_30 = arith.constant 0 : index
    %c6 = arith.constant 6 : index
    %c0_31 = arith.constant 0 : index
    %63 = vector.load %arg6[%c0_30, %c6, %c0_31] : memref<2x8x32xf32, #tpu.memory_space<vmem>>, vector<2x1x32xf32>
    %64 = vector.shape_cast %63 : vector<2x1x32xf32> to vector<2x32xf32>
    %65 = vector.shape_cast %62 : vector<2x32xf32> to vector<2x1x32xf32>
    tpu.vector_store %arg6[%c0_30, %c6, %c0_31], %65 {strides = array<i32>} : memref<2x8x32xf32, #tpu.memory_space<vmem>>, vector<2x1x32xf32>,
    %66 = vector.extract_strided_slice %7 {offsets = [0, 7, 0], sizes = [2, 1, 32], strides = [1, 1, 1]} : vector<2x8x32xf32> to vector<2x1x32xf32>
    %67 = vector.shape_cast %66 : vector<2x1x32xf32> to vector<2x32xf32>
    %cst_32 = arith.constant dense<0.000000e+00> : vector<2x32xf32>
    %68 = tpu.matmul %62, %8, %cst_32 {dimension_numbers = #tpu.dot_dimension_numbers<[1], [0], [0], [1], [0, 0, 1, 1], [], []>, precision = #tpu.contract_precision<fp32>} : vector<2x32xf32>, vector<32x32xf32>, vector<2x32xf32> -> vector<2x32xf32>
    %69 = arith.addf %67, %68 : vector<2x32xf32>
    %70 = math.tanh %69 : vector<2x32xf32>
    %c0_33 = arith.constant 0 : index
    %c7 = arith.constant 7 : index
    %c0_34 = arith.constant 0 : index
    %71 = vector.load %arg6[%c0_33, %c7, %c0_34] : memref<2x8x32xf32, #tpu.memory_space<vmem>>, vector<2x1x32xf32>
    %72 = vector.shape_cast %71 : vector<2x1x32xf32> to vector<2x32xf32>
    %73 = vector.shape_cast %70 : vector<2x32xf32> to vector<2x1x32xf32>
    tpu.vector_store %arg6[%c0_33, %c7, %c0_34], %73 {strides = array<i32>} : memref<2x8x32xf32, #tpu.memory_space<vmem>>, vector<2x1x32xf32>,
    return
  }
  func.func @transform_0(%arg0: i32) -> (i32, i32) {
    %c0_i32 = arith.constant 0 : i32
    %c0_i32_0 = arith.constant 0 : i32
    %c0_i32_1 = arith.constant 0 : i32
    return %c0_i32, %c0_i32_0 : i32, i32
  }
  func.func @transform_1(%arg0: i32) -> (i32, i32, i32) {
    %c0_i32 = arith.constant 0 : i32
    %c0_i32_0 = arith.constant 0 : i32
    %c0_i32_1 = arith.constant 0 : i32
    %c0_i32_2 = arith.constant 0 : i32
    return %c0_i32, %c0_i32_0, %c0_i32_1 : i32, i32, i32
  }
  func.func @transform_2(%arg0: i32) -> (i32, i32) {
    %c0_i32 = arith.constant 0 : i32
    %c0_i32_0 = arith.constant 0 : i32
    %c0_i32_1 = arith.constant 0 : i32
    return %c0_i32, %c0_i32_0 : i32, i32
  }
  func.func @transform_3(%arg0: i32) -> (i32, i32) {
    %c0_i32 = arith.constant 0 : i32
    %c0_i32_0 = arith.constant 0 : i32
    %c0_i32_1 = arith.constant 0 : i32
    return %c0_i32, %c0_i32_0 : i32, i32
  }
  func.func @transform_4(%arg0: i32) -> (i32, i32) {
    %c0_i32 = arith.constant 0 : i32
    %c0_i32_0 = arith.constant 0 : i32
    %c0_i32_1 = arith.constant 0 : i32
    return %c0_i32, %c0_i32_0 : i32, i32
  }
  func.func @transform_5(%arg0: i32) -> (i32, i32, i32) {
    %c0_i32 = arith.constant 0 : i32
    %c0_i32_0 = arith.constant 0 : i32
    %c0_i32_1 = arith.constant 0 : i32
    %c0_i32_2 = arith.constant 0 : i32
    return %c0_i32, %c0_i32_0, %c0_i32_1 : i32, i32, i32
  }
}

</mosaic_0001>

<bundles_post_ra>
// kernel: decoder_block_forward.1
= control target key start
LH: loop header
LB: loop body
LE: loop exit
PB: predicated region body
PF: predicated region fallthrough
CT: control target
= control target key end

     0   :  { %10 = vsyncpa [#allocation3], 0  ;;  %s6558_s0 = inlined_call_operand.vmem [shape: f32[2,32], index: 0, kind: input, shape index: {}]   ;;  %s6559_s1 = inlined_call_operand.hbm [shape: f32[2,8,16], index: 1, kind: input, shape index: {}]   ;;  %s6560_s2 = inlined_call_operand.hbm [shape: f32[16,32], index: 2, kind: input, shape index: {}]   ;;  %s6561_s3 = inlined_call_operand.hbm [shape: f32[32,32], index: 3, kind: input, shape index: {}]   ;;  %s6562_s4 = inlined_call_operand.vmem [shape: f32[1,32], index: 4, kind: input, shape index: {}]   ;;  %s6563_s5 = inlined_call_operand.hbm [shape: f32[2,8,32], index: 5, kind: output, shape index: {}]  }
   0x1   :  { %11 = vsyncpa [#allocation6], 0 }
   0x2   :  { %12 = vsyncpa [#allocation4], 0  ;;  %s6004_s18 = smov [#allocation5]   ;;  %s6005_s20 = smov [#allocation2]  }
   0x3   :  { %s32_s19 = sshll.u32 %s6004_s18, 4  ;;  %s20_s21 = sshll.u32 %s6005_s20, 4  ;;  %s33_s19 = int_to_ptr.vmem [resolvable:$true] %s32_s19  ;;  %s6043_s21 = int_to_ptr.vmem [resolvable:$true] %s20_s21 }
   0x4   :  { %s5910_s24 = scalar_lea.hbm %s6560_s2, 256 }
   0x5   :  { %p5911_p0 = scmp.ne.s32.totalorder %s6560_s2, %s5910_s24  ;;  %p5914_p1 = scmp.lt.u32.totalorder %s5910_s24, %s6560_s2 }
   0x7   :  { %p5916_p2 = pnand %p5914_p1, %p5911_p0 }
   0x9   :  { %5919 = shalt.err (!%p5916_p2)
}
   0xa   :  { %s5920_s29 = scalar_lea.vmem %s33_s19, 256  ;;  %p5925_p4 = scmp.lt.s32.totalorder %s33_s19, %s33_s19 }
   0xb   :  { %p5921_p3 = scmp.ne.s32.totalorder %s33_s19, %s5920_s29  ;;  %p5926_p5 = scmp.lt.s32.totalorder %s5920_s29, %s5920_s29 }
   0xd   :  { %p5927_p6 = por %p5926_p5, %p5925_p4 }
   0xf   :  { %p5928_p7 = pnand %p5927_p6, %p5921_p3 }
  0x11   :  { %5931 = shalt.err (!%p5928_p7)
}
  0x12   :  { %s6006_s30 = smov 128   ;;  %s6007_s6 = smov 8  }
  0x13   :  { %38 = dma.hbm_to_vmem [thread:$0]  %s6560_s2, 256, %s33_s19, [#allocation6], %s6006_s30, %s6006_s30, %s6007_s6  }
  0x14   :  { %s5932_s11 = scalar_lea.hbm %s6559_s1, 256 }
  0x15   :  { %p5933_p8 = scmp.ne.s32.totalorder %s6559_s1, %s5932_s11  ;;  %p5936_p9 = scmp.lt.u32.totalorder %s5932_s11, %s6559_s1 }
  0x17   :  { %p5938_p10 = pnand %p5936_p9, %p5933_p8 }
  0x19   :  { %5941 = shalt.err (!%p5938_p10)
}
  0x1a   :  { %s5942_s16 = scalar_lea.vmem %s6043_s21, 256  ;;  %p5947_p12 = scmp.lt.s32.totalorder %s6043_s21, %s6043_s21 }
  0x1b   :  { %p5943_p11 = scmp.ne.s32.totalorder %s6043_s21, %s5942_s16  ;;  %p5948_p13 = scmp.lt.s32.totalorder %s5942_s16, %s5942_s16 }
  0x1d   :  { %p5949_p0 = por %p5948_p13, %p5947_p12 }
  0x1f   :  { %p5950_p1 = pnand %p5949_p0, %p5943_p11 }
  0x21   :  { %5953 = shalt.err (!%p5950_p1)
}
  0x22   :  { %26 = dma.hbm_to_vmem [thread:$0]  %s6559_s1, 256, %s6043_s21, [#allocation3], %s6006_s30, %s6006_s30, %s6007_s6  }
  0x23   :  { %s6008_s18 = smov [#allocation7]   ;;  %s5954_s23 = scalar_lea.hbm %s6561_s3, 512 }
  0x24   :  { %s44_s19 = sshll.u32 %s6008_s18, 4  ;;  %p5955_p2 = scmp.ne.s32.totalorder %s6561_s3, %s5954_s23  ;;  %s45_s19 = int_to_ptr.vmem [resolvable:$true] %s44_s19 }
  0x25   :  { %p5958_p3 = scmp.lt.u32.totalorder %s5954_s23, %s6561_s3 }
  0x27   :  { %p5960_p4 = pnand %p5958_p3, %p5955_p2 }
  0x29   :  { %5963 = shalt.err (!%p5960_p4)
}
  0x2a   :  { %s5964_s28 = scalar_lea.vmem %s45_s19, 512  ;;  %p5969_p6 = scmp.lt.s32.totalorder %s45_s19, %s45_s19 }
  0x2b   :  { %p5965_p5 = scmp.ne.s32.totalorder %s45_s19, %s5964_s28  ;;  %p5970_p7 = scmp.lt.s32.totalorder %s5964_s28, %s5964_s28 }
  0x2d   :  { %p5971_p8 = por %p5970_p7, %p5969_p6 }
  0x2f   :  { %p5972_p9 = pnand %p5971_p8, %p5965_p5 }
  0x31   :  { %5975 = shalt.err (!%p5972_p9)
}
  0x32   :  { %50 = dma.hbm_to_vmem [thread:$0]  %s6561_s3, 512, %s45_s19, [#allocation6], %s6006_s30, %s6006_s30, %s6007_s6  }
  0x33   :  { %5998 = dma.done.wait [#allocation3], 256  }
  0x34   :  { %5999 = vsyncadd [#allocation3], 4294967040 }
  0x35   :  { %6000 = dma.done.wait [#allocation6], 768  }
  0x36   :  { %6001 = vsyncadd [#allocation6], 4294966528  ;;  %vm73_vm0 = vcmask 130048   ;;  %v64_v0 = vld [vmem:[#allocation5] sm:$0xff]  ;;  %v65_v1 = vld [vmem:[#allocation5 + $0x8] sm:$0xff]  ;;  %vm587_vm1 = vcmask 261120  }
  0x37   :  { %v62_v2 = vld [vmem:[#allocation2] sm:$0xff]  ;;  %v81_v3 = vand.u32 4294901760, %v64_v0  ;;  %v84_v4 = vand.u32 4294901760, %v65_v1  ;;  %v63_v5 = vld [vmem:[#allocation2 + $0x8] sm:$0xff]  ;;  %v584_v13 = vld [vmem:[#allocation7 + $0x10] sm:$0xff]  ;;  %v6009_v30 = vmov 0.0|0.0  }
  0x38   :  { %v75_v6 = vsel %vm73_vm0, %v62_v2, 0  ;;  %v582_v7 = vld [vmem:[#allocation7] sm:$0xff]  ;;  %v583_v8 = vld [vmem:[#allocation7 + $0x8] sm:$0xff]  ;;  %v78_v9 = vsel %vm73_vm0, %v63_v5, 0  ;;  %v585_v18 = vld [vmem:[#allocation7 + $0x18] sm:$0xff]  ;;  %v598_v21 = vand.u32 4294901760, %v584_v13 }
  0x39   :  { %v6095_v10 = vand.u32 4294901760, %v75_v6  ;;  %v592_v11 = vand.u32 4294901760, %v582_v7  ;;  %v595_v12 = vand.u32 4294901760, %v583_v8  ;;  %v6097_v14 = vpack.c.bf16 %v84_v4, %v81_v3  ;;  %v586_v19 = vld [vmem:[%s6558_s0] sm:$0x3] }
  0x3a   :  { %v6099_v15 = vand.u32 4294901760, %v78_v9  ;;  %v6101_v16 = vsub.f32 %v64_v0, %v81_v3  ;;  %v6103_v17 = vsub.f32 %v65_v1, %v84_v4  ;;  %v589_v25 = vsel %vm587_vm1, %v586_v19, 0 }
  0x3b   :  { %v6109_v20 = vsub.f32 %v75_v6, %v6095_v10  ;;  %4907 = vmatprep.mubr.f32.mxu0 %v6095_v10  ;;  %5467 = vmatprep.subr.bf16.mxu1 %v6097_v14  ;;  %v6121_v27 = vpack.c.bf16 %v595_v12, %v592_v11  ;;  %v601_v28 = vand.u32 4294901760, %v585_v18  ;;  %v6123_v29 = vand.u32 4294901760, %v589_v25 }
  0x3c   :  { %v6114_v22 = vsub.f32 %v78_v9, %v6099_v15  ;;  %v170_v23 = vand.u32 4294901760, %v6101_v16  ;;  %v177_v24 = vand.u32 4294901760, %v6103_v17  ;;  %5469 = vmatpush3.bf16.msra.mxu1 %v6097_v14  ;;  %v6133_v34 = vsub.f32 %v582_v7, %v592_v11  ;;  %v4631_v9 = vld [vmem:[%s6562_s4] ss:$0 sm:$0xff]  ;;  %s6012_s4 = smov [#allocation8]  }
  0x3d   :  { %v149_v26 = vand.u32 4294901760, %v6109_v20  ;;  %5490 = vmatprep.subr.bf16.mxu1 %v6009_v30  ;;  %v6139_v36 = vsub.f32 %v589_v25, %v6123_v29  ;;  %v6141_v37 = vsub.f32 %v583_v8, %v595_v12  ;;  %v6143_v38 = vsub.f32 %v584_v13, %v598_v21  ;;  %s4618_s8 = sshll.u32 %s6012_s4, 4  ;;  %s4619_s8 = int_to_ptr.vmem [resolvable:$true] %s4618_s8 }
  0x3e   :  { %v159_v31 = vand.u32 4294901760, %v6114_v22  ;;  %v171_v32 = vsub.f32 %v6101_v16, %v170_v23  ;;  %v178_v33 = vsub.f32 %v6103_v17, %v177_v24  ;;  %v673_v42 = vand.u32 4294901760, %v6133_v34  ;;  %s5976_s9 = scalar_lea.vmem %s4619_s8, 256  ;;  %p5981_p11 = scmp.lt.s32.totalorder %s4619_s8, %s4619_s8 }
  0x3f   :  { %v150_v35 = vsub.f32 %v6109_v20, %v149_v26  ;;  %v662_v44 = vand.u32 4294901760, %v6139_v36  ;;  %v680_v45 = vand.u32 4294901760, %v6141_v37  ;;  %v687_v46 = vand.u32 4294901760, %v6143_v38  ;;  %p5977_p10 = scmp.ne.s32.totalorder %s4619_s8, %s5976_s9  ;;  %p5982_p12 = scmp.lt.s32.totalorder %s5976_s9, %s5976_s9 }
  0x40   :  { %v160_v39 = vsub.f32 %v6114_v22, %v159_v31  ;;  %v172_v40 = vand.u32 4294901760, %v171_v32  ;;  %v179_v41 = vand.u32 4294901760, %v178_v33  ;;  %v674_v49 = vsub.f32 %v6133_v34, %v673_v42 }
  0x41   :  { %v151_v43 = vand.u32 4294901760, %v150_v35  ;;  %v6155_v50 = vsub.f32 %v585_v18, %v601_v28  ;;  %v5474_v51 = vpack.c.bf16 %v6103_v17, %v6101_v16  ;;  %v681_v52 = vsub.f32 %v6141_v37, %v680_v45  ;;  %p5983_p13 = por %p5982_p12, %p5981_p11 }
  0x42   :  { %v161_v47 = vand.u32 4294901760, %v160_v39  ;;  %v5470_v48 = vpack.c.bf16 %v179_v41, %v172_v40  ;;  %v663_v53 = vsub.f32 %v6139_v36, %v662_v44  ;;  %v6167_v55 = vpack.c.bf16 %v601_v28, %v598_v21 }
  0x43   :  { %4900 = vmatprep.mubr.f32.mxu1 %v151_v43  ;;  %v694_v54 = vand.u32 4294901760, %v6155_v50  ;;  %v675_v56 = vand.u32 4294901760, %v674_v49  ;;  %v682_v57 = vand.u32 4294901760, %v681_v52  ;;  %v688_v58 = vsub.f32 %v6143_v38, %v687_v46  ;;  %p5984_p0 = pnand %p5983_p13, %p5977_p10 }
  0x44   :  { %4901 = vmatmul.mubr.f32.vlgmr.msra.gmra.mrb[0].mxu1 %v161_v47  ;;  %5471 = vmatprep.subr.bf16.mxu0 %v5470_v48  ;;  %vm6010_vm2 = vmmov 0   ;;  %v6011_v59 = vmov 0.0   ;;  %v664_v61 = vand.u32 4294901760, %v663_v53  ;;  %v5482_v2 = vpack.c.bf16 %v177_v24, %v170_v23 }
  0x45   :  { %5492 = vmatpush3.bf16.msra.mxu1 %v6121_v27  ;;  %5473 = vmatpush3.bf16.msra.mxu0 %v5470_v48  ;;  %v695_v60 = vsub.f32 %v6155_v50, %v694_v54  ;;  %v6178_v62 = vpack.c.bf16 %v682_v57, %v675_v56  ;;  %v689_v63 = vand.u32 4294901760, %v688_v58  ;;  %v6197_v3 = vpack.c.bf16 %v6141_v37, %v6133_v34 }
  0x46   :  { %5493 = vmatprep.subr.bf16.mxu1 %v6009_v30  ;;  %4946 = vmatprep.mubr.msk.f32.mxu1 %vm6010_vm2, %v6011_v59  ;;  %v6207_v4 = vpack.c.bf16 %v6155_v50, %v6143_v38  ;;  %v6229_v5 = vpack.c.bf16 %v680_v45, %v673_v42  ;;  %v6240_v6 = vpack.c.bf16 %v694_v54, %v687_v46  ;;  %vm1084_vm3 = vcmask 253952  }
  0x47   :  { %5475 = vmatprep.subr.bf16.mxu0 %v5474_v51  ;;  %v696_v0 = vand.u32 4294901760, %v695_v60  ;;  %vm1090_vm4 = vcmask 1041409   ;;  %vm1587_vm5 = vcmask 254977   ;;  %vm2090_vm6 = vcmask 256002  }
  0x48   :  { %4908 = vmatmul.mubr.f32.vlgmr.msra.gmra.mrb[0].mxu0 %v6099_v15  ;;  %vm2594_vm7 = vcmask 257027   ;;  %vm3098_vm8 = vcmask 258052   ;;  %vm3602_vm9 = vcmask 259077   ;;  %vm4106_vm10 = vcmask 260102  }
  0x49   :  { %5495 = vmatpush3.bf16.msra.mxu1 %v6167_v55  ;;  %5477 = vmatpush3.bf16.msra.mxu0 %v5474_v51  ;;  %v6184_v1 = vpack.c.bf16 %v696_v0, %v689_v63  ;;  %vm4610_vm11 = vcmask 261127  }
  0x4a   :  { %5496 = vmatprep.subr.bf16.mxu1 %v6009_v30  ;;  %4914 = vmatprep.mubr.f32.mxu0 %v6109_v20 }
  0x4b   :  { %5479 = vmatprep.subr.bf16.mxu0 %v6097_v14 }
  0x4c   :  { %4947 = vmatmul.mubr.f32.vlgmr.msra.gmra.mrb[2].mxu1 %v664_v61 }
  0x4d   :  { %5498 = vmatpush3.bf16.msra.mxu1 %v6178_v62  ;;  %4957 = vmatprep.mubr.msk.f32.mxu1 %vm6010_vm2, %v6011_v59 }
  0x4e   :  { %5499 = vmatprep.subr.bf16.mxu1 %v6009_v30 }
  0x50   :  { %4915 = vmatmul.mubr.f32.vlgmr.msra.gmra.mrb[0].mxu0 %v6114_v22 }
  0x51   :  { %5501 = vmatpush3.bf16.msra.mxu1 %v6184_v1  ;;  %5481 = vmatpush3.bf16.msra.mxu0 %v6097_v14 }
  0x52   :  { %5502 = vmatprep.subr.bf16.mxu1 %v6009_v30  ;;  %4921 = vmatprep.mubr.f32.mxu0 %v149_v26 }
  0x53   :  { %5483 = vmatprep.subr.bf16.mxu0 %v5482_v2 }
  0x54   :  { %4958 = vmatmul.mubr.f32.vlgmr.msra.gmra.mrb[2].mxu1 %v6123_v29 }
  0x55   :  { %5504 = vmatpush3.bf16.msra.mxu1 %v6197_v3  ;;  %4968 = vmatprep.mubr.msk.f32.mxu1 %vm6010_vm2, %v6011_v59 }
  0x56   :  { %5505 = vmatprep.subr.bf16.mxu1 %v6009_v30 }
  0x58   :  { %4922 = vmatmul.mubr.f32.vlgmr.msra.gmra.mrb[0].mxu0 %v159_v31 }
  0x59   :  { %5507 = vmatpush3.bf16.msra.mxu1 %v6207_v4  ;;  %5485 = vmatpush3.bf16.msra.mxu0 %v5482_v2 }
  0x5a   :  { %5508 = vmatprep.subr.bf16.mxu1 %v6009_v30  ;;  %4928 = vmatprep.mubr.f32.mxu0 %v6095_v10 }
  0x5b   :  { %5487 = vmatprep.subr.bf16.mxu0 %v6097_v14 }
  0x5c   :  { %4969 = vmatmul.mubr.f32.vlgmr.msra.gmra.mrb[2].mxu1 %v6139_v36 }
  0x5d   :  { %5510 = vmatpush3.bf16.msra.mxu1 %v6121_v27  ;;  %4979 = vmatprep.mubr.msk.f32.mxu1 %vm6010_vm2, %v6011_v59 }
  0x5e   :  { %5511 = vmatprep.subr.bf16.mxu1 %v6009_v30 }
  0x60   :  { %4929 = vmatmul.mubr.f32.vlgmr.msra.gmra.mrb[0].mxu0 %v6099_v15 }
  0x61   :  { %5513 = vmatpush3.bf16.msra.mxu1 %v6167_v55  ;;  %5489 = vmatpush3.bf16.msra.mxu0 %v6097_v14 }
  0x62   :  { %5514 = vmatprep.subr.bf16.mxu1 %v6009_v30  ;;  %4935 = vmatprep.mubr.f32.mxu0 %v6095_v10 }
  0x63   :  { %5532 = vmatprep.subr.bf16.mxu0 %v6009_v30 }
  0x64   :  { %4980 = vmatmul.mubr.f32.vlgmr.msra.gmra.mrb[2].mxu1 %v662_v44 }
  0x65   :  { %5516 = vmatpush3.bf16.msra.mxu1 %v6229_v5  ;;  %4990 = vmatprep.mubr.msk.f32.mxu1 %vm6010_vm2, %v6011_v59 }
  0x66   :  { %5517 = vmatprep.subr.bf16.mxu1 %v6009_v30 }
  0x68   :  { %4936 = vmatmul.mubr.f32.vlgmr.msra.gmra.mrb[0].mxu0 %v6099_v15 }
  0x69   :  { %5519 = vmatpush3.bf16.msra.mxu1 %v6240_v6  ;;  %5534 = vmatpush3.bf16.msra.mxu0 %v6178_v62 }
  0x6a   :  { %5520 = vmatprep.subr.bf16.mxu1 %v6009_v30  ;;  %5535 = vmatprep.subr.bf16.mxu0 %v6009_v30 }
  0x6b   :  { %5023 = vmatprep.mubr.msk.f32.mxu0 %vm6010_vm2, %v6011_v59 }
  0x6c   :  { %4991 = vmatmul.mubr.f32.vlgmr.msra.gmra.mrb[2].mxu1 %v6123_v29 }
  0x6d   :  { %5522 = vmatpush3.bf16.msra.mxu1 %v6121_v27  ;;  %5001 = vmatprep.mubr.msk.f32.mxu1 %vm6010_vm2, %v6011_v59 }
  0x6e   :  { %5523 = vmatprep.subr.bf16.mxu1 %v6009_v30  ;;  %5537 = vmatpush3.bf16.msra.mxu0 %v6184_v1 }
  0x6f   :  { %5538 = vmatprep.subr.bf16.mxu0 %v6009_v30 }
  0x71   :  { %5525 = vmatpush3.bf16.msra.mxu1 %v6167_v55 }
  0x72   :  { %5526 = vmatprep.subr.bf16.mxu1 %v6009_v30 }
  0x74   :  { %5002 = vmatmul.mubr.f32.vlgmr.msra.gmra.mrb[2].mxu1 %v6123_v29 }
  0x75   :  { %5528 = vmatpush3.bf16.msra.mxu1 %v6121_v27  ;;  %5012 = vmatprep.mubr.msk.f32.mxu1 %vm6010_vm2, %v6011_v59 }
  0x76   :  { %5529 = vmatprep.subr.bf16.mxu1 %v6009_v30 }
  0x79   :  { %5531 = vmatpush3.bf16.msra.mxu1 %v6167_v55 }
  0x7a   :  { %5562 = vmatprep.subr.bf16.mxu1 %v6009_v30 }
 0x117   :  { %v4902_v7 = vpop.f32.mrb[0].mxu1 }
 0x118   :  { %v153_v8 = vpop.f32.mrb[1].mxu1  ;;  %v164_v10 = vadd.f32 %v4902_v7, %v4631_v9 }
 0x119   :  { %v154_v11 = vadd.f32 %v4631_v9, %v153_v8 }
 0x13b   :  { %v4937_v12 = vpop.f32.mrb[0].mxu0 }
 0x13c   :  { %v6271_v13 = vadd.f32 %v4937_v12, %v164_v10  ;;  %v572_v14 = vpop.f32.mrb[1].mxu0 }
 0x13d   :  { %v6273_v15 = vadd.f32 %v572_v14, %v154_v11 }
 0x147   :  { %v1072_v16 = vpop.f32.mrb[2].mxu1 }
 0x148   :  { %v1077_v17 = vrot.slane %v1072_v16, 1  ;;  %v1080_v18 = vadd.f32 %v6273_v15, %v1072_v16  ;;  %v5003_v19 = vpop.f32.mrb[3].mxu1 }
 0x14a   :  { %v1081_v20 = vadd.f32 %v6271_v13, %v1077_v17  ;;  %5878 = vtanh.f32 %v1080_v18 }
 0x14c   :  { %5880 = vtanh.f32 %v1081_v20 }
 0x154   :  { %v5879_v21 = vpop.eup %5878 }
 0x155   :  { %1085 = vst.msk [vmem:[#allocation8] sm:$0x1] %vm1084_vm3, %v5879_v21 }
 0x156   :  { %v5881_v22 = vpop.eup %5880 }
 0x157   :  { %1086 = vst.msk [vmem:[#allocation8 + $0x8] sm:$0x1] %vm1084_vm3, %v5881_v22  ;;  %v1089_v23 = vrot.slane %v5881_v22, 7 }
 0x159   :  { %v1091_v24 = vsel %vm1090_vm4, %v1089_v23, %v5879_v21 }
 0x15a   :  { %v1092_v25 = vsel %vm587_vm1, %v1091_v24, 0 }
 0x15b   :  { %v1163_v26 = vand.u32 4294901760, %v1092_v25 }
 0x15d   :  { %v1164_v28 = vsub.f32 %v1092_v25, %v1163_v26  ;;  %5024 = vmatmul.mubr.f32.vlgmr.msra.gmra.mrb[2].mxu0 %v1163_v26 }
 0x15e   :  { %5540 = vmatpush3.bf16.msra.mxu0 %v6197_v3  ;;  %5034 = vmatprep.mubr.msk.f32.mxu0 %vm6010_vm2, %v6011_v59 }
 0x15f   :  { %5541 = vmatprep.subr.bf16.mxu0 %v6009_v30  ;;  %v1165_v29 = vand.u32 4294901760, %v1164_v28 }
 0x161   :  { %v1166_v31 = vsub.f32 %v1164_v28, %v1165_v29 }
 0x162   :  { %5543 = vmatpush3.bf16.msra.mxu0 %v6207_v4 }
 0x163   :  { %v1167_v32 = vand.u32 4294901760, %v1166_v31  ;;  %5544 = vmatprep.subr.bf16.mxu0 %v6009_v30 }
 0x165   :  { %5013 = vmatmul.mubr.f32.vlgmr.msra.gmra.mrb[4].mxu1 %v1167_v32  ;;  %5035 = vmatmul.mubr.f32.vlgmr.msra.gmra.mrb[2].mxu0 %v1164_v28 }
 0x166   :  { %5546 = vmatpush3.bf16.msra.mxu0 %v6121_v27  ;;  %5045 = vmatprep.mubr.msk.f32.mxu0 %vm6010_vm2, %v6011_v59 }
 0x167   :  { %5547 = vmatprep.subr.bf16.mxu0 %v6009_v30  ;;  %5564 = vmatpush3.bf16.msra.mxu1 %v6121_v27 }
 0x168   :  { %5565 = vmatprep.subr.bf16.mxu1 %v6009_v30  ;;  %5078 = vmatprep.mubr.msk.f32.mxu1 %vm6010_vm2, %v6011_v59 }
 0x16a   :  { %5549 = vmatpush3.bf16.msra.mxu0 %v6167_v55 }
 0x16b   :  { %5550 = vmatprep.subr.bf16.mxu0 %v6009_v30  ;;  %5567 = vmatpush3.bf16.msra.mxu1 %v6167_v55 }
 0x16c   :  { %5568 = vmatprep.subr.bf16.mxu1 %v6009_v30 }
 0x16d   :  { %5046 = vmatmul.mubr.f32.vlgmr.msra.gmra.mrb[2].mxu0 %v1165_v29 }
 0x16e   :  { %5552 = vmatpush3.bf16.msra.mxu0 %v6229_v5  ;;  %5056 = vmatprep.mubr.msk.f32.mxu0 %vm6010_vm2, %v6011_v59 }
 0x16f   :  { %5553 = vmatprep.subr.bf16.mxu0 %v6009_v30 }
 0x172   :  { %5555 = vmatpush3.bf16.msra.mxu0 %v6240_v6 }
 0x173   :  { %5556 = vmatprep.subr.bf16.mxu0 %v6009_v30 }
 0x175   :  { %5057 = vmatmul.mubr.f32.vlgmr.msra.gmra.mrb[2].mxu0 %v1163_v26 }
 0x176   :  { %5558 = vmatpush3.bf16.msra.mxu0 %v6121_v27  ;;  %5067 = vmatprep.mubr.msk.f32.mxu0 %vm6010_vm2, %v6011_v59 }
 0x177   :  { %5559 = vmatprep.subr.bf16.mxu0 %v6009_v30 }
 0x17a   :  { %5561 = vmatpush3.bf16.msra.mxu0 %v6167_v55 }
 0x17b   :  { %5598 = vmatprep.subr.bf16.mxu0 %v6009_v30 }
 0x17d   :  { %5068 = vmatmul.mubr.f32.vlgmr.msra.gmra.mrb[2].mxu0 %v1163_v26 }
 0x17e   :  { %5600 = vmatpush3.bf16.msra.mxu0 %v6121_v27  ;;  %5144 = vmatprep.mubr.msk.f32.mxu0 %vm6010_vm2, %v6011_v59 }
 0x17f   :  { %5601 = vmatprep.subr.bf16.mxu0 %v6009_v30 }
 0x182   :  { %5603 = vmatpush3.bf16.msra.mxu0 %v6167_v55 }
 0x183   :  { %5604 = vmatprep.subr.bf16.mxu0 %v6009_v30 }
 0x238   :  { %v1169_v33 = vpop.f32.mrb[4].mxu1 }
 0x239   :  { %v5014_v34 = vpop.f32.mrb[5].mxu1 }
 0x250   :  { %v1575_v35 = vpop.f32.mrb[2].mxu0 }
 0x251   :  { %v5782_v36 = vadd.f32 %v1575_v35, %v1169_v33  ;;  %v5069_v37 = vpop.f32.mrb[3].mxu0 }
 0x253   :  { %v1580_v38 = vrot.slane %v5782_v36, 7  ;;  %v1584_v39 = vadd.f32 %v5782_v36, %v6271_v13 }
 0x255   :  { %v1583_v40 = vadd.f32 %v6273_v15, %v1580_v38  ;;  %5882 = vtanh.f32 %v1584_v39 }
 0x257   :  { %5884 = vtanh.f32 %v1583_v40 }
 0x25f   :  { %v5883_v41 = vpop.eup %5882 }
 0x260   :  { %1589 = vst.msk [vmem:[#allocation8 + $0x8] sm:$0x2] %vm1587_vm5, %v5883_v41 }
 0x261   :  { %v5885_v42 = vpop.eup %5884 }
 0x262   :  { %1588 = vst.msk [vmem:[#allocation8] sm:$0x2] %vm1587_vm5, %v5885_v42  ;;  %v1592_v43 = vrot.slane %v5885_v42, 1 }
 0x264   :  { %v1593_v44 = vsel %vm1090_vm4, %v5883_v41, %v1592_v43 }
 0x265   :  { %v1594_v45 = vsel %vm587_vm1, %v1593_v44, 0 }
 0x266   :  { %v1665_v46 = vand.u32 4294901760, %v1594_v45 }
 0x268   :  { %v1666_v47 = vsub.f32 %v1594_v45, %v1665_v46 }
 0x26a   :  { %v1667_v48 = vand.u32 4294901760, %v1666_v47 }
 0x26c   :  { %v1668_v49 = vsub.f32 %v1666_v47, %v1667_v48 }
 0x26e   :  { %v1669_v50 = vand.u32 4294901760, %v1668_v49 }
 0x270   :  { %5079 = vmatmul.mubr.f32.vlgmr.msra.gmra.mrb[6].mxu1 %v1669_v50 }
 0x271   :  { %5570 = vmatpush3.bf16.msra.mxu1 %v6178_v62  ;;  %5089 = vmatprep.mubr.msk.f32.mxu1 %vm6010_vm2, %v6011_v59 }
 0x272   :  { %5571 = vmatprep.subr.bf16.mxu1 %v6009_v30 }
 0x275   :  { %5573 = vmatpush3.bf16.msra.mxu1 %v6184_v1 }
 0x276   :  { %5574 = vmatprep.subr.bf16.mxu1 %v6009_v30 }
 0x278   :  { %5090 = vmatmul.mubr.f32.vlgmr.msra.gmra.mrb[6].mxu1 %v1665_v46 }
 0x279   :  { %5576 = vmatpush3.bf16.msra.mxu1 %v6197_v3  ;;  %5100 = vmatprep.mubr.msk.f32.mxu1 %vm6010_vm2, %v6011_v59 }
 0x27a   :  { %5577 = vmatprep.subr.bf16.mxu1 %v6009_v30 }
 0x27d   :  { %5579 = vmatpush3.bf16.msra.mxu1 %v6207_v4 }
 0x27e   :  { %5580 = vmatprep.subr.bf16.mxu1 %v6009_v30 }
 0x280   :  { %5101 = vmatmul.mubr.f32.vlgmr.msra.gmra.mrb[6].mxu1 %v1666_v47 }
 0x281   :  { %5582 = vmatpush3.bf16.msra.mxu1 %v6121_v27  ;;  %5111 = vmatprep.mubr.msk.f32.mxu1 %vm6010_vm2, %v6011_v59 }
 0x282   :  { %5583 = vmatprep.subr.bf16.mxu1 %v6009_v30 }
 0x285   :  { %5585 = vmatpush3.bf16.msra.mxu1 %v6167_v55 }
 0x286   :  { %5586 = vmatprep.subr.bf16.mxu1 %v6009_v30 }
 0x288   :  { %5112 = vmatmul.mubr.f32.vlgmr.msra.gmra.mrb[6].mxu1 %v1667_v48 }
 0x289   :  { %5588 = vmatpush3.bf16.msra.mxu1 %v6229_v5  ;;  %5122 = vmatprep.mubr.msk.f32.mxu1 %vm6010_vm2, %v6011_v59 }
 0x28a   :  { %5589 = vmatprep.subr.bf16.mxu1 %v6009_v30 }
 0x28d   :  { %5591 = vmatpush3.bf16.msra.mxu1 %v6240_v6 }
 0x28e   :  { %5592 = vmatprep.subr.bf16.mxu1 %v6009_v30 }
 0x290   :  { %5123 = vmatmul.mubr.f32.vlgmr.msra.gmra.mrb[6].mxu1 %v1665_v46 }
 0x291   :  { %5594 = vmatpush3.bf16.msra.mxu1 %v6121_v27  ;;  %5133 = vmatprep.mubr.msk.f32.mxu1 %vm6010_vm2, %v6011_v59 }
 0x292   :  { %5595 = vmatprep.subr.bf16.mxu1 %v6009_v30 }
 0x295   :  { %5597 = vmatpush3.bf16.msra.mxu1 %v6167_v55 }
 0x296   :  { %5634 = vmatprep.subr.bf16.mxu1 %v6009_v30 }
 0x298   :  { %5134 = vmatmul.mubr.f32.vlgmr.msra.gmra.mrb[6].mxu1 %v1665_v46 }
 0x299   :  { %5636 = vmatpush3.bf16.msra.mxu1 %v6121_v27  ;;  %5210 = vmatprep.mubr.msk.f32.mxu1 %vm6010_vm2, %v6011_v59 }
 0x29a   :  { %5637 = vmatprep.subr.bf16.mxu1 %v6009_v30 }
 0x29d   :  { %5639 = vmatpush3.bf16.msra.mxu1 %v6167_v55 }
 0x29e   :  { %5640 = vmatprep.subr.bf16.mxu1 %v6009_v30 }
 0x36b   :  { %v2077_v51 = vpop.f32.mrb[6].mxu1 }
 0x36c   :  { %v2082_v52 = vrot.slane %v2077_v51, 6  ;;  %v2083_v53 = vrot.slane %v2077_v51, 7  ;;  %v5135_v54 = vpop.f32.mrb[7].mxu1 }
 0x36e   :  { %v2086_v56 = vadd.f32 %v6273_v15, %v2082_v52  ;;  %v2087_v57 = vadd.f32 %v6271_v13, %v2083_v53 }
 0x370   :  { %5886 = vtanh.f32 %v2086_v56 }
 0x371   :  { %5888 = vtanh.f32 %v2087_v57 }
 0x37a   :  { %v5887_v58 = vpop.eup %5886 }
 0x37b   :  { %v5889_v60 = vpop.eup %5888  ;;  %2091 = vst.msk [vmem:[#allocation8] sm:$0x4] %vm2090_vm6, %v5887_v58  ;;  %v2095_v61 = vrot.slane %v5887_v58, 2 }
 0x37c   :  { %2092 = vst.msk [vmem:[#allocation8 + $0x8] sm:$0x4] %vm2090_vm6, %v5889_v60  ;;  %v2096_v63 = vrot.slane %v5889_v60, 1 }
 0x37e   :  { %v2097_v0 = vsel %vm1090_vm4, %v2096_v63, %v2095_v61 }
 0x37f   :  { %v2098_v2 = vsel %vm587_vm1, %v2097_v0, 0 }
 0x380   :  { %v2169_v7 = vand.u32 4294901760, %v2098_v2 }
 0x382   :  { %v2170_v8 = vsub.f32 %v2098_v2, %v2169_v7 }
 0x384   :  { %v2171_v9 = vand.u32 4294901760, %v2170_v8 }
 0x386   :  { %v2172_v10 = vsub.f32 %v2170_v8, %v2171_v9 }
 0x388   :  { %v2173_v11 = vand.u32 4294901760, %v2172_v10 }
 0x38a   :  { %5145 = vmatmul.mubr.f32.vlgmr.msra.gmra.mrb[4].mxu0 %v2173_v11 }
 0x38b   :  { %5606 = vmatpush3.bf16.msra.mxu0 %v6178_v62  ;;  %5155 = vmatprep.mubr.msk.f32.mxu0 %vm6010_vm2, %v6011_v59 }
 0x38c   :  { %5607 = vmatprep.subr.bf16.mxu0 %v6009_v30 }
 0x38f   :  { %5609 = vmatpush3.bf16.msra.mxu0 %v6184_v1 }
 0x390   :  { %5610 = vmatprep.subr.bf16.mxu0 %v6009_v30 }
 0x392   :  { %5156 = vmatmul.mubr.f32.vlgmr.msra.gmra.mrb[4].mxu0 %v2169_v7 }
 0x393   :  { %5612 = vmatpush3.bf16.msra.mxu0 %v6197_v3  ;;  %5166 = vmatprep.mubr.msk.f32.mxu0 %vm6010_vm2, %v6011_v59 }
 0x394   :  { %5613 = vmatprep.subr.bf16.mxu0 %v6009_v30 }
 0x397   :  { %5615 = vmatpush3.bf16.msra.mxu0 %v6207_v4 }
 0x398   :  { %5616 = vmatprep.subr.bf16.mxu0 %v6009_v30 }
 0x39a   :  { %5167 = vmatmul.mubr.f32.vlgmr.msra.gmra.mrb[4].mxu0 %v2170_v8 }
 0x39b   :  { %5618 = vmatpush3.bf16.msra.mxu0 %v6121_v27  ;;  %5177 = vmatprep.mubr.msk.f32.mxu0 %vm6010_vm2, %v6011_v59 }
 0x39c   :  { %5619 = vmatprep.subr.bf16.mxu0 %v6009_v30 }
 0x39f   :  { %5621 = vmatpush3.bf16.msra.mxu0 %v6167_v55 }
 0x3a0   :  { %5622 = vmatprep.subr.bf16.mxu0 %v6009_v30 }
 0x3a2   :  { %5178 = vmatmul.mubr.f32.vlgmr.msra.gmra.mrb[4].mxu0 %v2171_v9 }
 0x3a3   :  { %5624 = vmatpush3.bf16.msra.mxu0 %v6229_v5  ;;  %5188 = vmatprep.mubr.msk.f32.mxu0 %vm6010_vm2, %v6011_v59 }
 0x3a4   :  { %5625 = vmatprep.subr.bf16.mxu0 %v6009_v30 }
 0x3a7   :  { %5627 = vmatpush3.bf16.msra.mxu0 %v6240_v6 }
 0x3a8   :  { %5628 = vmatprep.subr.bf16.mxu0 %v6009_v30 }
 0x3aa   :  { %5189 = vmatmul.mubr.f32.vlgmr.msra.gmra.mrb[4].mxu0 %v2169_v7 }
 0x3ab   :  { %5630 = vmatpush3.bf16.msra.mxu0 %v6121_v27  ;;  %5199 = vmatprep.mubr.msk.f32.mxu0 %vm6010_vm2, %v6011_v59 }
 0x3ac   :  { %5631 = vmatprep.subr.bf16.mxu0 %v6009_v30 }
 0x3af   :  { %5633 = vmatpush3.bf16.msra.mxu0 %v6167_v55 }
 0x3b0   :  { %5670 = vmatprep.subr.bf16.mxu0 %v6009_v30 }
 0x3b2   :  { %5200 = vmatmul.mubr.f32.vlgmr.msra.gmra.mrb[4].mxu0 %v2169_v7 }
 0x3b3   :  { %5672 = vmatpush3.bf16.msra.mxu0 %v6121_v27  ;;  %5276 = vmatprep.mubr.msk.f32.mxu0 %vm6010_vm2, %v6011_v59 }
 0x3b4   :  { %5673 = vmatprep.subr.bf16.mxu0 %v6009_v30 }
 0x3b7   :  { %5675 = vmatpush3.bf16.msra.mxu0 %v6167_v55 }
 0x3b8   :  { %5676 = vmatprep.subr.bf16.mxu0 %v6009_v30 }
 0x485   :  { %v2581_v12 = vpop.f32.mrb[4].mxu0 }
 0x486   :  { %v2586_v14 = vrot.slane %v2581_v12, 5  ;;  %v2587_v16 = vrot.slane %v2581_v12, 6  ;;  %v5201_v17 = vpop.f32.mrb[5].mxu0 }
 0x488   :  { %v2590_v18 = vadd.f32 %v6273_v15, %v2586_v14  ;;  %v2591_v19 = vadd.f32 %v6271_v13, %v2587_v16 }
 0x48a   :  { %5890 = vtanh.f32 %v2590_v18 }
 0x48b   :  { %5892 = vtanh.f32 %v2591_v19 }
 0x494   :  { %v5891_v20 = vpop.eup %5890 }
 0x495   :  { %v5893_v21 = vpop.eup %5892  ;;  %2595 = vst.msk [vmem:[#allocation8] sm:$0x8] %vm2594_vm7, %v5891_v20  ;;  %v2599_v22 = vrot.slane %v5891_v20, 3 }
 0x496   :  { %2596 = vst.msk [vmem:[#allocation8 + $0x8] sm:$0x8] %vm2594_vm7, %v5893_v21  ;;  %v2600_v23 = vrot.slane %v5893_v21, 2 }
 0x498   :  { %v2601_v24 = vsel %vm1090_vm4, %v2600_v23, %v2599_v22 }
 0x499   :  { %v2602_v25 = vsel %vm587_vm1, %v2601_v24, 0 }
 0x49a   :  { %v2673_v26 = vand.u32 4294901760, %v2602_v25 }
 0x49c   :  { %v2674_v28 = vsub.f32 %v2602_v25, %v2673_v26 }
 0x49e   :  { %v2675_v29 = vand.u32 4294901760, %v2674_v28 }
 0x4a0   :  { %v2676_v31 = vsub.f32 %v2674_v28, %v2675_v29 }
 0x4a2   :  { %v2677_v32 = vand.u32 4294901760, %v2676_v31 }
 0x4a4   :  { %5211 = vmatmul.mubr.f32.vlgmr.msra.gmra.mrb[8].mxu1 %v2677_v32 }
 0x4a5   :  { %5642 = vmatpush3.bf16.msra.mxu1 %v6178_v62  ;;  %5221 = vmatprep.mubr.msk.f32.mxu1 %vm6010_vm2, %v6011_v59 }
 0x4a6   :  { %5643 = vmatprep.subr.bf16.mxu1 %v6009_v30 }
 0x4a9   :  { %5645 = vmatpush3.bf16.msra.mxu1 %v6184_v1 }
 0x4aa   :  { %5646 = vmatprep.subr.bf16.mxu1 %v6009_v30 }
 0x4ac   :  { %5222 = vmatmul.mubr.f32.vlgmr.msra.gmra.mrb[8].mxu1 %v2673_v26 }
 0x4ad   :  { %5648 = vmatpush3.bf16.msra.mxu1 %v6197_v3  ;;  %5232 = vmatprep.mubr.msk.f32.mxu1 %vm6010_vm2, %v6011_v59 }
 0x4ae   :  { %5649 = vmatprep.subr.bf16.mxu1 %v6009_v30 }
 0x4b1   :  { %5651 = vmatpush3.bf16.msra.mxu1 %v6207_v4 }
 0x4b2   :  { %5652 = vmatprep.subr.bf16.mxu1 %v6009_v30 }
 0x4b4   :  { %5233 = vmatmul.mubr.f32.vlgmr.msra.gmra.mrb[8].mxu1 %v2674_v28 }
 0x4b5   :  { %5654 = vmatpush3.bf16.msra.mxu1 %v6121_v27  ;;  %5243 = vmatprep.mubr.msk.f32.mxu1 %vm6010_vm2, %v6011_v59 }
 0x4b6   :  { %5655 = vmatprep.subr.bf16.mxu1 %v6009_v30 }
 0x4b9   :  { %5657 = vmatpush3.bf16.msra.mxu1 %v6167_v55 }
 0x4ba   :  { %5658 = vmatprep.subr.bf16.mxu1 %v6009_v30 }
 0x4bc   :  { %5244 = vmatmul.mubr.f32.vlgmr.msra.gmra.mrb[8].mxu1 %v2675_v29 }
 0x4bd   :  { %5660 = vmatpush3.bf16.msra.mxu1 %v6229_v5  ;;  %5254 = vmatprep.mubr.msk.f32.mxu1 %vm6010_vm2, %v6011_v59 }
 0x4be   :  { %5661 = vmatprep.subr.bf16.mxu1 %v6009_v30 }
 0x4c1   :  { %5663 = vmatpush3.bf16.msra.mxu1 %v6240_v6 }
 0x4c2   :  { %5664 = vmatprep.subr.bf16.mxu1 %v6009_v30 }
 0x4c4   :  { %5255 = vmatmul.mubr.f32.vlgmr.msra.gmra.mrb[8].mxu1 %v2673_v26 }
 0x4c5   :  { %5666 = vmatpush3.bf16.msra.mxu1 %v6121_v27  ;;  %5265 = vmatprep.mubr.msk.f32.mxu1 %vm6010_vm2, %v6011_v59 }
 0x4c6   :  { %5667 = vmatprep.subr.bf16.mxu1 %v6009_v30 }
 0x4c9   :  { %5669 = vmatpush3.bf16.msra.mxu1 %v6167_v55 }
 0x4ca   :  { %5706 = vmatprep.subr.bf16.mxu1 %v6009_v30 }
 0x4cc   :  { %5266 = vmatmul.mubr.f32.vlgmr.msra.gmra.mrb[8].mxu1 %v2673_v26 }
 0x4cd   :  { %5708 = vmatpush3.bf16.msra.mxu1 %v6121_v27  ;;  %5342 = vmatprep.mubr.msk.f32.mxu1 %vm6010_vm2, %v6011_v59 }
 0x4ce   :  { %5709 = vmatprep.subr.bf16.mxu1 %v6009_v30 }
 0x4d1   :  { %5711 = vmatpush3.bf16.msra.mxu1 %v6167_v55 }
 0x4d2   :  { %5712 = vmatprep.subr.bf16.mxu1 %v6009_v30 }
 0x59f   :  { %v3085_v33 = vpop.f32.mrb[8].mxu1 }
 0x5a0   :  { %v3090_v34 = vrot.slane %v3085_v33, 4  ;;  %v3091_v35 = vrot.slane %v3085_v33, 5  ;;  %v5267_v36 = vpop.f32.mrb[9].mxu1 }
 0x5a2   :  { %v3094_v37 = vadd.f32 %v6273_v15, %v3090_v34  ;;  %v3095_v38 = vadd.f32 %v6271_v13, %v3091_v35 }
 0x5a4   :  { %5894 = vtanh.f32 %v3094_v37 }
 0x5a5   :  { %5896 = vtanh.f32 %v3095_v38 }
 0x5ae   :  { %v5895_v39 = vpop.eup %5894 }
 0x5af   :  { %v5897_v40 = vpop.eup %5896  ;;  %3099 = vst.msk [vmem:[#allocation8] sm:$0x10] %vm3098_vm8, %v5895_v39  ;;  %v3103_v41 = vrot.slane %v5895_v39, 4 }
 0x5b0   :  { %3100 = vst.msk [vmem:[#allocation8 + $0x8] sm:$0x10] %vm3098_vm8, %v5897_v40  ;;  %v3104_v42 = vrot.slane %v5897_v40, 3 }
 0x5b2   :  { %v3105_v43 = vsel %vm1090_vm4, %v3104_v42, %v3103_v41 }
 0x5b3   :  { %v3106_v44 = vsel %vm587_vm1, %v3105_v43, 0 }
 0x5b4   :  { %v3177_v45 = vand.u32 4294901760, %v3106_v44 }
 0x5b6   :  { %v3178_v46 = vsub.f32 %v3106_v44, %v3177_v45 }
 0x5b8   :  { %v3179_v47 = vand.u32 4294901760, %v3178_v46 }
 0x5ba   :  { %v3180_v48 = vsub.f32 %v3178_v46, %v3179_v47 }
 0x5bc   :  { %v3181_v49 = vand.u32 4294901760, %v3180_v48 }
 0x5be   :  { %5277 = vmatmul.mubr.f32.vlgmr.msra.gmra.mrb[6].mxu0 %v3181_v49 }
 0x5bf   :  { %5678 = vmatpush3.bf16.msra.mxu0 %v6178_v62  ;;  %5287 = vmatprep.mubr.msk.f32.mxu0 %vm6010_vm2, %v6011_v59 }
 0x5c0   :  { %5679 = vmatprep.subr.bf16.mxu0 %v6009_v30 }
 0x5c3   :  { %5681 = vmatpush3.bf16.msra.mxu0 %v6184_v1 }
 0x5c4   :  { %5682 = vmatprep.subr.bf16.mxu0 %v6009_v30 }
 0x5c6   :  { %5288 = vmatmul.mubr.f32.vlgmr.msra.gmra.mrb[6].mxu0 %v3177_v45 }
 0x5c7   :  { %5684 = vmatpush3.bf16.msra.mxu0 %v6197_v3  ;;  %5298 = vmatprep.mubr.msk.f32.mxu0 %vm6010_vm2, %v6011_v59 }
 0x5c8   :  { %5685 = vmatprep.subr.bf16.mxu0 %v6009_v30 }
 0x5cb   :  { %5687 = vmatpush3.bf16.msra.mxu0 %v6207_v4 }
 0x5cc   :  { %5688 = vmatprep.subr.bf16.mxu0 %v6009_v30 }
 0x5ce   :  { %5299 = vmatmul.mubr.f32.vlgmr.msra.gmra.mrb[6].mxu0 %v3178_v46 }
 0x5cf   :  { %5690 = vmatpush3.bf16.msra.mxu0 %v6121_v27  ;;  %5309 = vmatprep.mubr.msk.f32.mxu0 %vm6010_vm2, %v6011_v59 }
 0x5d0   :  { %5691 = vmatprep.subr.bf16.mxu0 %v6009_v30 }
 0x5d3   :  { %5693 = vmatpush3.bf16.msra.mxu0 %v6167_v55 }
 0x5d4   :  { %5694 = vmatprep.subr.bf16.mxu0 %v6009_v30 }
 0x5d6   :  { %5310 = vmatmul.mubr.f32.vlgmr.msra.gmra.mrb[6].mxu0 %v3179_v47 }
 0x5d7   :  { %5696 = vmatpush3.bf16.msra.mxu0 %v6229_v5  ;;  %5320 = vmatprep.mubr.msk.f32.mxu0 %vm6010_vm2, %v6011_v59 }
 0x5d8   :  { %5697 = vmatprep.subr.bf16.mxu0 %v6009_v30 }
 0x5db   :  { %5699 = vmatpush3.bf16.msra.mxu0 %v6240_v6 }
 0x5dc   :  { %5700 = vmatprep.subr.bf16.mxu0 %v6009_v30 }
 0x5de   :  { %5321 = vmatmul.mubr.f32.vlgmr.msra.gmra.mrb[6].mxu0 %v3177_v45 }
 0x5df   :  { %5702 = vmatpush3.bf16.msra.mxu0 %v6121_v27  ;;  %5331 = vmatprep.mubr.msk.f32.mxu0 %vm6010_vm2, %v6011_v59 }
 0x5e0   :  { %5703 = vmatprep.subr.bf16.mxu0 %v6009_v30 }
 0x5e3   :  { %5705 = vmatpush3.bf16.msra.mxu0 %v6167_v55 }
 0x5e4   :  { %5742 = vmatprep.subr.bf16.mxu0 %v6009_v30 }
 0x5e6   :  { %5332 = vmatmul.mubr.f32.vlgmr.msra.gmra.mrb[6].mxu0 %v3177_v45 }
 0x5e7   :  { %5744 = vmatpush3.bf16.msra.mxu0 %v6121_v27  ;;  %5408 = vmatprep.mubr.msk.f32.mxu0 %vm6010_vm2, %v6011_v59 }
 0x5e8   :  { %5745 = vmatprep.subr.bf16.mxu0 %v6009_v30 }
 0x5eb   :  { %5747 = vmatpush3.bf16.msra.mxu0 %v6167_v55 }
 0x5ec   :  { %5748 = vmatprep.subr.bf16.mxu0 %v6009_v30 }
 0x6b9   :  { %v3589_v50 = vpop.f32.mrb[6].mxu0 }
 0x6ba   :  { %v3594_v51 = vrot.slane %v3589_v50, 3  ;;  %v3595_v52 = vrot.slane %v3589_v50, 4  ;;  %v5333_v53 = vpop.f32.mrb[7].mxu0 }
 0x6bc   :  { %v3598_v54 = vadd.f32 %v6273_v15, %v3594_v51  ;;  %v3599_v56 = vadd.f32 %v6271_v13, %v3595_v52 }
 0x6be   :  { %5898 = vtanh.f32 %v3598_v54 }
 0x6bf   :  { %5900 = vtanh.f32 %v3599_v56 }
 0x6c8   :  { %v5899_v57 = vpop.eup %5898 }
 0x6c9   :  { %v5901_v58 = vpop.eup %5900  ;;  %3603 = vst.msk [vmem:[#allocation8] sm:$0x20] %vm3602_vm9, %v5899_v57  ;;  %v3607_v60 = vrot.slane %v5899_v57, 5 }
 0x6ca   :  { %3604 = vst.msk [vmem:[#allocation8 + $0x8] sm:$0x20] %vm3602_vm9, %v5901_v58  ;;  %v3608_v61 = vrot.slane %v5901_v58, 4 }
 0x6cc   :  { %v3609_v63 = vsel %vm1090_vm4, %v3608_v61, %v3607_v60 }
 0x6cd   :  { %v3610_v0 = vsel %vm587_vm1, %v3609_v63, 0 }
 0x6ce   :  { %v3681_v2 = vand.u32 4294901760, %v3610_v0 }
 0x6d0   :  { %v3682_v7 = vsub.f32 %v3610_v0, %v3681_v2 }
 0x6d2   :  { %v3683_v8 = vand.u32 4294901760, %v3682_v7 }
 0x6d4   :  { %v3684_v9 = vsub.f32 %v3682_v7, %v3683_v8 }
 0x6d6   :  { %v3685_v10 = vand.u32 4294901760, %v3684_v9 }
 0x6d8   :  { %5343 = vmatmul.mubr.f32.vlgmr.msra.gmra.mrb[10].mxu1 %v3685_v10 }
 0x6d9   :  { %5714 = vmatpush3.bf16.msra.mxu1 %v6178_v62  ;;  %5353 = vmatprep.mubr.msk.f32.mxu1 %vm6010_vm2, %v6011_v59 }
 0x6da   :  { %5715 = vmatprep.subr.bf16.mxu1 %v6009_v30 }
 0x6dd   :  { %5717 = vmatpush3.bf16.msra.mxu1 %v6184_v1 }
 0x6de   :  { %5718 = vmatprep.subr.bf16.mxu1 %v6009_v30 }
 0x6e0   :  { %5354 = vmatmul.mubr.f32.vlgmr.msra.gmra.mrb[10].mxu1 %v3681_v2 }
 0x6e1   :  { %5720 = vmatpush3.bf16.msra.mxu1 %v6197_v3  ;;  %5364 = vmatprep.mubr.msk.f32.mxu1 %vm6010_vm2, %v6011_v59 }
 0x6e2   :  { %5721 = vmatprep.subr.bf16.mxu1 %v6009_v30 }
 0x6e5   :  { %5723 = vmatpush3.bf16.msra.mxu1 %v6207_v4 }
 0x6e6   :  { %5724 = vmatprep.subr.bf16.mxu1 %v6009_v30 }
 0x6e8   :  { %5365 = vmatmul.mubr.f32.vlgmr.msra.gmra.mrb[10].mxu1 %v3682_v7 }
 0x6e9   :  { %5726 = vmatpush3.bf16.msra.mxu1 %v6121_v27  ;;  %5375 = vmatprep.mubr.msk.f32.mxu1 %vm6010_vm2, %v6011_v59 }
 0x6ea   :  { %5727 = vmatprep.subr.bf16.mxu1 %v6009_v30 }
 0x6ed   :  { %5729 = vmatpush3.bf16.msra.mxu1 %v6167_v55 }
 0x6ee   :  { %5730 = vmatprep.subr.bf16.mxu1 %v6009_v30 }
 0x6f0   :  { %5376 = vmatmul.mubr.f32.vlgmr.msra.gmra.mrb[10].mxu1 %v3683_v8 }
 0x6f1   :  { %5732 = vmatpush3.bf16.msra.mxu1 %v6229_v5  ;;  %5386 = vmatprep.mubr.msk.f32.mxu1 %vm6010_vm2, %v6011_v59 }
 0x6f2   :  { %5733 = vmatprep.subr.bf16.mxu1 %v6009_v30 }
 0x6f5   :  { %5735 = vmatpush3.bf16.msra.mxu1 %v6240_v6 }
 0x6f6   :  { %5736 = vmatprep.subr.bf16.mxu1 %v6009_v30 }
 0x6f8   :  { %5387 = vmatmul.mubr.f32.vlgmr.msra.gmra.mrb[10].mxu1 %v3681_v2 }
 0x6f9   :  { %5738 = vmatpush3.bf16.msra.mxu1 %v6121_v27  ;;  %5397 = vmatprep.mubr.msk.f32.mxu1 %vm6010_vm2, %v6011_v59 }
 0x6fa   :  { %5739 = vmatprep.subr.bf16.mxu1 %v6009_v30 }
 0x6fd   :  { %5741 = vmatpush3.bf16.msra.mxu1 %v6167_v55 }
 0x700   :  { %5398 = vmatmul.mubr.f32.vlgmr.msra.gmra.mrb[10].mxu1 %v3681_v2 }
 0x7d3   :  { %v4093_v11 = vpop.f32.mrb[10].mxu1 }
 0x7d4   :  { %v4098_v12 = vrot.slane %v4093_v11, 2  ;;  %v4099_v14 = vrot.slane %v4093_v11, 3  ;;  %v5399_v16 = vpop.f32.mrb[11].mxu1 }
 0x7d6   :  { %v4102_v17 = vadd.f32 %v6273_v15, %v4098_v12  ;;  %v4103_v18 = vadd.f32 %v6271_v13, %v4099_v14 }
 0x7d8   :  { %5902 = vtanh.f32 %v4102_v17 }
 0x7d9   :  { %5904 = vtanh.f32 %v4103_v18 }
 0x7e2   :  { %v5903_v19 = vpop.eup %5902 }
 0x7e3   :  { %v5905_v20 = vpop.eup %5904  ;;  %4107 = vst.msk [vmem:[#allocation8] sm:$0x40] %vm4106_vm10, %v5903_v19  ;;  %v4111_v21 = vrot.slane %v5903_v19, 6 }
 0x7e4   :  { %4108 = vst.msk [vmem:[#allocation8 + $0x8] sm:$0x40] %vm4106_vm10, %v5905_v20  ;;  %v4112_v22 = vrot.slane %v5905_v20, 5 }
 0x7e6   :  { %v4113_v23 = vsel %vm1090_vm4, %v4112_v22, %v4111_v21 }
 0x7e7   :  { %v4114_v24 = vsel %vm587_vm1, %v4113_v23, 0 }
 0x7e8   :  { %v4185_v25 = vand.u32 4294901760, %v4114_v24 }
 0x7ea   :  { %v4186_v26 = vsub.f32 %v4114_v24, %v4185_v25 }
 0x7ec   :  { %v4187_v28 = vand.u32 4294901760, %v4186_v26 }
 0x7ee   :  { %v4188_v29 = vsub.f32 %v4186_v26, %v4187_v28 }
 0x7f0   :  { %v4189_v31 = vand.u32 4294901760, %v4188_v29 }
 0x7f2   :  { %5409 = vmatmul.mubr.f32.vlgmr.msra.gmra.mrb[8].mxu0 %v4189_v31 }
 0x7f3   :  { %5750 = vmatpush3.bf16.msra.mxu0 %v6178_v62  ;;  %5419 = vmatprep.mubr.msk.f32.mxu0 %vm6010_vm2, %v6011_v59 }
 0x7f4   :  { %5751 = vmatprep.subr.bf16.mxu0 %v6009_v30 }
 0x7f7   :  { %5753 = vmatpush3.bf16.msra.mxu0 %v6184_v1 }
 0x7f8   :  { %5754 = vmatprep.subr.bf16.mxu0 %v6009_v30 }
 0x7fa   :  { %5420 = vmatmul.mubr.f32.vlgmr.msra.gmra.mrb[8].mxu0 %v4185_v25 }
 0x7fb   :  { %5756 = vmatpush3.bf16.msra.mxu0 %v6197_v3  ;;  %5430 = vmatprep.mubr.msk.f32.mxu0 %vm6010_vm2, %v6011_v59 }
 0x7fc   :  { %5757 = vmatprep.subr.bf16.mxu0 %v6009_v30 }
 0x7ff   :  { %5759 = vmatpush3.bf16.msra.mxu0 %v6207_v4 }
 0x800   :  { %5760 = vmatprep.subr.bf16.mxu0 %v6009_v30 }
 0x802   :  { %5431 = vmatmul.mubr.f32.vlgmr.msra.gmra.mrb[8].mxu0 %v4186_v26 }
 0x803   :  { %5762 = vmatpush3.bf16.msra.mxu0 %v6121_v27  ;;  %5441 = vmatprep.mubr.msk.f32.mxu0 %vm6010_vm2, %v6011_v59 }
 0x804   :  { %5763 = vmatprep.subr.bf16.mxu0 %v6009_v30 }
 0x807   :  { %5765 = vmatpush3.bf16.msra.mxu0 %v6167_v55 }
 0x808   :  { %5766 = vmatprep.subr.bf16.mxu0 %v6009_v30 }
 0x80a   :  { %5442 = vmatmul.mubr.f32.vlgmr.msra.gmra.mrb[8].mxu0 %v4187_v28 }
 0x80b   :  { %5768 = vmatpush3.bf16.msra.mxu0 %v6229_v5  ;;  %5452 = vmatprep.mubr.msk.f32.mxu0 %vm6010_vm2, %v6011_v59 }
 0x80c   :  { %5769 = vmatprep.subr.bf16.mxu0 %v6009_v30 }
 0x80f   :  { %5771 = vmatpush3.bf16.msra.mxu0 %v6240_v6 }
 0x810   :  { %5772 = vmatprep.subr.bf16.mxu0 %v6009_v30 }
 0x812   :  { %5453 = vmatmul.mubr.f32.vlgmr.msra.gmra.mrb[8].mxu0 %v4185_v25 }
 0x813   :  { %5774 = vmatpush3.bf16.msra.mxu0 %v6121_v27  ;;  %5463 = vmatprep.mubr.msk.f32.mxu0 %vm6010_vm2, %v6011_v59 }
 0x814   :  { %5775 = vmatprep.subr.bf16.mxu0 %v6009_v30 }
 0x817   :  { %5777 = vmatpush3.bf16.msra.mxu0 %v6167_v55 }
 0x81a   :  { %5464 = vmatmul.mubr.f32.vlgmr.msra.gmra.mrb[8].mxu0 %v4185_v25 }
 0x8ed   :  { %v4597_v62 = vpop.f32.mrb[8].mxu0 }
 0x8ee   :  { %v4602_v1 = vrot.slane %v4597_v62, 1  ;;  %v4603_v3 = vrot.slane %v4597_v62, 2  ;;  %v5465_v4 = vpop.f32.mrb[9].mxu0 }
 0x8f0   :  { %v4606_v5 = vadd.f32 %v6273_v15, %v4602_v1  ;;  %v4607_v6 = vadd.f32 %v6271_v13, %v4603_v3 }
 0x8f2   :  { %5906 = vtanh.f32 %v4606_v5 }
 0x8f3   :  { %5908 = vtanh.f32 %v4607_v6 }
 0x8fc   :  { %v5907_v27 = vpop.eup %5906 }
 0x8fd   :  { %v5909_v59 = vpop.eup %5908  ;;  %4611 = vst.msk [vmem:[#allocation8] sm:$0x80] %vm4610_vm11, %v5907_v27 }
 0x8fe   :  { %4612 = vst.msk [vmem:[#allocation8 + $0x8] sm:$0x80] %vm4610_vm11, %v5909_v59 }
 0x8ff   :  { %5987 = shalt.err (!%p5984_p0)
}
 0x900   :  { %s5988_s12 = scalar_lea.hbm %s6563_s5, 256 }
 0x901   :  { %p5989_p1 = scmp.ne.s32.totalorder %s6563_s5, %s5988_s12  ;;  %p5992_p2 = scmp.lt.u32.totalorder %s5988_s12, %s6563_s5 }
 0x903   :  { %p5994_p3 = pnand %p5992_p2, %p5989_p1 }
 0x905   :  { %5997 = shalt.err (!%p5994_p3)
}
 0x906   :  { %4624 = dma.vmem_to_hbm [thread:$0]  %s4619_s8, 256, %s6563_s5, [#allocation4], %s6006_s30, %s6006_s30, %s6007_s6  }
 0x907   :  { %6002 = dma.done.wait [#allocation4], 256  }
 0x908   :  { %6003 = vsyncadd [#allocation4], 4294967040 }
 0x909   :  { %4628 = vsyncpa [#allocation3], 1 }
 0x90a   :  { %4629 = vsyncpa [#allocation6], 1 }
 0x90b   :  { %4630 = vsyncpa [#allocation4], 1 }

</bundles_post_ra>
